<compile_context>
chip_gen: v5e
topology: v5e:2x2
jax: 0.10.0
libtpu: 0.0.40
codegen_flags: <defaults>
</compile_context>

<pallas_src>
import jax
import jax.numpy as jnp
from jax.experimental import pallas as pl
from jax.experimental.pallas import tpu as pltpu


def _round_up(x, m):
    return ((x + m - 1) // m) * m


def _choose_tb(B):
    """Batch-tile (lane) width.

    Tiny batches -> one tile.  Bigger batches -> aim for a >=2-step grid
    (both v7x TensorCores get work) with tiles capped at 2048 lanes so the
    ~0.35us per-grid-step overhead is amortized.
    """
    b_ceil = _round_up(max(B, 1), 128)
    if b_ceil <= 256:
        return b_ceil
    half = _round_up((b_ceil + 1) // 2, 128)
    return min(half, 2048)


def critic_kernel(xT_ref, w1T_ref, b1_ref, w2T_ref, b2_ref, w3_ref, b3_ref, o_ref):
    # xT_ref: (S_pad, TB) bf16 tile of the transposed batch; weights are VMEM-resident.
    xT = xT_ref[...]
    # Layer 1: (H, S) @ (S, TB) -> (H, TB), f32 accumulation on the MXU.
    h1 = jnp.dot(w1T_ref[...], xT, preferred_element_type=jnp.float32)
    h1 = jnp.maximum(h1 + b1_ref[...], 0.0)
    # Layer 2: (H, H) @ (H, TB) -> (H, TB).
    h2 = jnp.dot(w2T_ref[...], h1.astype(jnp.bfloat16),
                 preferred_element_type=jnp.float32)
    h2 = jnp.maximum(h2 + b2_ref[...], 0.0)
    # Head (H -> 1): tiny VPU multiply + sublane reduce (only H_pad=32 rows now);
    # output stays lane-dense (1, TB).
    out = jnp.sum(h2 * w3_ref[...], axis=0, keepdims=True) + b3_ref[0]
    o_ref[...] = out.astype(o_ref.dtype)


def prepare_params(params):
    """One-time packing of PyTorch-layout (in, out) f32 params into kernel layout."""
    w1, b1, w2, b2, w3, b3 = params
    S, H = w1.shape
    S_pad = _round_up(S, 16)   # full bf16 sublane pack for the streamed x tile
    H_pad = _round_up(H, 16)   # bf16 sublane pack; no more padding to 128

    w1T = jnp.zeros((H_pad, S_pad), jnp.bfloat16).at[:H, :S].set(
        w1.T.astype(jnp.bfloat16))
    w2T = jnp.zeros((H_pad, H_pad), jnp.bfloat16).at[:H, :H].set(
        w2.T.astype(jnp.bfloat16))
    b1c = jnp.zeros((H_pad, 1), jnp.float32).at[:H, 0].set(
        b1.reshape(-1).astype(jnp.float32))
    b2c = jnp.zeros((H_pad, 1), jnp.float32).at[:H, 0].set(
        b2.reshape(-1).astype(jnp.float32))
    w3c = jnp.zeros((H_pad, 1), jnp.float32).at[:H, :].set(
        w3.astype(jnp.float32))
    b3s = b3.reshape(-1)[:1].astype(jnp.float32)  # (1,) scalar for SMEM
    return (w1T, b1c, w2T, b2c, w3c, b3s)


@jax.jit
def critic_forward_packed(x, packed):
    """x: (B, state_dim) f32; packed = prepare_params(params)."""
    w1T, b1c, w2T, b2c, w3c, b3s = packed
    B, S = x.shape
    H_pad, S_pad = w1T.shape

    TB = _choose_tb(B)
    B_pad = _round_up(B, TB)

    # One-pass, bf16, feature-major batch slab (zero padded rows/columns).
    xT = jnp.pad(x.T.astype(jnp.bfloat16), ((0, S_pad - S), (0, B_pad - B)))

    def resident(arr):
        return pl.BlockSpec(arr.shape, lambda i: (0,) * arr.ndim)

    out = pl.pallas_call(
        critic_kernel,
        out_shape=jax.ShapeDtypeStruct((1, B_pad), jnp.float32),
        grid=(B_pad // TB,),
        in_specs=[
            pl.BlockSpec((S_pad, TB), lambda i: (0, i)),        # x tile: pipelined
            resident(w1T),                                      # weights stay in VMEM
            resident(b1c),
            resident(w2T),
            resident(b2c),
            resident(w3c),
            pl.BlockSpec(memory_space=pltpu.MemorySpace.SMEM),  # b3 scalar in SMEM
        ],
        out_specs=pl.BlockSpec((1, TB), lambda i: (0, i)),      # lane-dense output
        compiler_params=pltpu.CompilerParams(
            dimension_semantics=("parallel",),                  # 2 TCs on v7x
        ),
    )(xT, w1T, b1c, w2T, b2c, w3c, b3s)

    return out[0, :B].reshape(B, 1)


def critic_forward(x, params):
    return critic_forward_packed(x, prepare_params(params))


def init_params(key, state_dim, hidden_dim):
    # PyTorch default init: U(-1/sqrt(fan_in), 1/sqrt(fan_in)); (in, out) layout.
    def linear(key, fan_in, fan_out):
        kw, kb = jax.random.split(key)
        bound = 1.0 / jnp.sqrt(fan_in)
        w = jax.random.uniform(kw, (fan_in, fan_out), jnp.float32, -bound, bound)
        b = jax.random.uniform(kb, (1, fan_out), jnp.float32, -bound, bound)
        return w, b

    k1, k2, k3 = jax.random.split(key, 3)
    w1, b1 = linear(k1, state_dim, hidden_dim)
    w2, b2 = linear(k2, hidden_dim, hidden_dim)
    w3, b3 = linear(k3, hidden_dim, 1)
    return (w1, b1, w2, b2, w3, b3)


def critic_ref(x, params):
    # Reference applying the same bf16 rounding the kernel uses for MXU operands.
    w1, b1, w2, b2, w3, b3 = params
    bf = lambda a: a.astype(jnp.bfloat16).astype(jnp.float32)
    hi = jax.lax.Precision.HIGHEST
    h1 = jnp.maximum(jnp.dot(bf(x), bf(w1), precision=hi) + b1, 0.0)
    h2 = jnp.maximum(jnp.dot(bf(h1), bf(w2), precision=hi) + b2, 0.0)
    return jnp.dot(h2, w3, precision=hi) + b3


if __name__ == "__main__":
    state_dim, hidden_dim = 8, 32
    key = jax.random.PRNGKey(0)
    kp, kx1, kx2 = jax.random.split(key, 3)
    params = init_params(kp, state_dim, hidden_dim)
    packed = prepare_params(params)  # one-time packing, outside the hot path

    # Small batch (single grid step).
    x_small = jax.random.normal(kx1, (8, state_dim), jnp.float32)
    out_small = jax.block_until_ready(critic_forward_packed(x_small, packed))
    ref_small = critic_ref(x_small, params)
    assert out_small.shape == (8, 1)
    assert jnp.allclose(out_small, ref_small, atol=1e-2, rtol=1e-2)

    # Larger, non-multiple-of-tile batch (multi-step pipelined grid + batch padding).
    x_big = jax.random.normal(kx2, (600, state_dim), jnp.float32)
    out_big = jax.block_until_ready(critic_forward_packed(x_big, packed))
    ref_big = critic_ref(x_big, params)
    assert out_big.shape == (600, 1)
    assert jnp.allclose(out_big, ref_big, atol=1e-2, rtol=1e-2)

    print("KERNEL_OK")
</pallas_src>

<mosaic_0001>
module attributes {stable_mosaic.version = 11 : i64} {
  func.func @critic_kernel(%arg0: i32, %arg1: memref<16x128xbf16, #tpu.memory_space<vmem>>, %arg2: memref<32x16xbf16, #tpu.memory_space<vmem>>, %arg3: memref<32x1xf32, #tpu.memory_space<vmem>>, %arg4: memref<32x32xbf16, #tpu.memory_space<vmem>>, %arg5: memref<32x1xf32, #tpu.memory_space<vmem>>, %arg6: memref<32x1xf32, #tpu.memory_space<vmem>>, %arg7: memref<1xf32, #tpu.memory_space<smem>>, %arg8: memref<1x128xf32, #tpu.memory_space<vmem>>) attributes {dimension_semantics = [#tpu.dimension_semantics<parallel>], iteration_bounds = array<i64: 1>, scalar_prefetch = 0 : i64, scratch_operands = 0 : i64, tpu.core_type = #tpu.core_type<tc>, window_params = [{transform_indices = @transform_0, window_bounds = array<i64: 16, 128>}, {pipeline_mode = #tpu.pipeline_mode<synchronous>, transform_indices = @transform_1, window_bounds = array<i64: 32, 16>}, {pipeline_mode = #tpu.pipeline_mode<synchronous>, transform_indices = @transform_2, window_bounds = array<i64: 32, 1>}, {pipeline_mode = #tpu.pipeline_mode<synchronous>, transform_indices = @transform_3, window_bounds = array<i64: 32, 32>}, {pipeline_mode = #tpu.pipeline_mode<synchronous>, transform_indices = @transform_4, window_bounds = array<i64: 32, 1>}, {pipeline_mode = #tpu.pipeline_mode<synchronous>, transform_indices = @transform_5, window_bounds = array<i64: 32, 1>}, {transform_indices = @transform_6, window_bounds = array<i64: 1>}, {transform_indices = @transform_7, window_bounds = array<i64: 1, 128>}]} {
    %c0 = arith.constant 0 : index
    %c0_0 = arith.constant 0 : index
    %0 = vector.load %arg1[%c0, %c0_0] : memref<16x128xbf16, #tpu.memory_space<vmem>>, vector<16x128xbf16>
    %c0_1 = arith.constant 0 : index
    %c0_2 = arith.constant 0 : index
    %1 = vector.load %arg2[%c0_1, %c0_2] : memref<32x16xbf16, #tpu.memory_space<vmem>>, vector<32x16xbf16>
    %cst = arith.constant dense<0.000000e+00> : vector<32x128xf32>
    %2 = tpu.matmul %1, %0, %cst {dimension_numbers = #tpu.dot_dimension_numbers<[1], [0], [0], [1], [0, 0, 1, 1], [], []>} : vector<32x16xbf16>, vector<16x128xbf16>, vector<32x128xf32> -> vector<32x128xf32>
    %c0_3 = arith.constant 0 : index
    %c0_4 = arith.constant 0 : index
    %3 = vector.load %arg3[%c0_3, %c0_4] : memref<32x1xf32, #tpu.memory_space<vmem>>, vector<32x1xf32>
    %4 = vector.broadcast %3 : vector<32x1xf32> to vector<32x128xf32>
    %5 = arith.addf %2, %4 : vector<32x128xf32>
    %cst_5 = arith.constant 0.000000e+00 : f32
    %6 = vector.broadcast %cst_5 : f32 to vector<32x128xf32>
    %7 = arith.maximumf %5, %6 : vector<32x128xf32>
    %c0_6 = arith.constant 0 : index
    %c0_7 = arith.constant 0 : index
    %8 = vector.load %arg4[%c0_6, %c0_7] : memref<32x32xbf16, #tpu.memory_space<vmem>>, vector<32x32xbf16>
    %9 = arith.truncf %7 : vector<32x128xf32> to vector<32x128xbf16>
    %cst_8 = arith.constant dense<0.000000e+00> : vector<32x128xf32>
    %10 = tpu.matmul %8, %9, %cst_8 {dimension_numbers = #tpu.dot_dimension_numbers<[1], [0], [0], [1], [0, 0, 1, 1], [], []>} : vector<32x32xbf16>, vector<32x128xbf16>, vector<32x128xf32> -> vector<32x128xf32>
    %c0_9 = arith.constant 0 : index
    %c0_10 = arith.constant 0 : index
    %11 = vector.load %arg5[%c0_9, %c0_10] : memref<32x1xf32, #tpu.memory_space<vmem>>, vector<32x1xf32>
    %12 = vector.broadcast %11 : vector<32x1xf32> to vector<32x128xf32>
    %13 = arith.addf %10, %12 : vector<32x128xf32>
    %cst_11 = arith.constant 0.000000e+00 : f32
    %14 = vector.broadcast %cst_11 : f32 to vector<32x128xf32>
    %15 = arith.maximumf %13, %14 : vector<32x128xf32>
    %c0_12 = arith.constant 0 : index
    %c0_13 = arith.constant 0 : index
    %16 = vector.load %arg6[%c0_12, %c0_13] : memref<32x1xf32, #tpu.memory_space<vmem>>, vector<32x1xf32>
    %17 = vector.broadcast %16 : vector<32x1xf32> to vector<32x128xf32>
    %18 = arith.mulf %15, %17 : vector<32x128xf32>
    %cst_14 = arith.constant dense<0.000000e+00> : vector<128xf32>
    %19 = vector.multi_reduction <add>, %18, %cst_14 [0] : vector<32x128xf32> to vector<128xf32>
    %20 = vector.shape_cast %19 : vector<128xf32> to vector<1x128xf32>
    %c0_15 = arith.constant 0 : index
    %21 = memref.load %arg7[%c0_15] : memref<1xf32, #tpu.memory_space<smem>>
    %22 = vector.broadcast %21 : f32 to vector<1x128xf32>
    %23 = arith.addf %20, %22 : vector<1x128xf32>
    %c0_16 = arith.constant 0 : index
    %c0_17 = arith.constant 0 : index
    %24 = vector.load %arg8[%c0_16, %c0_17] : memref<1x128xf32, #tpu.memory_space<vmem>>, vector<1x128xf32>
    tpu.vector_store %arg8[%c0_16, %c0_17], %23 {strides = array<i32>} : memref<1x128xf32, #tpu.memory_space<vmem>>, vector<1x128xf32>,
    return
  }
  func.func @transform_0(%arg0: i32) -> (i32, i32) {
    %c0_i32 = arith.constant 0 : i32
    %c0_i32_0 = arith.constant 0 : i32
    return %c0_i32, %arg0 : i32, i32
  }
  func.func @transform_1(%arg0: i32) -> (i32, i32) {
    %c0_i32 = arith.constant 0 : i32
    %c0_i32_0 = arith.constant 0 : i32
    %c0_i32_1 = arith.constant 0 : i32
    return %c0_i32, %c0_i32_0 : i32, i32
  }
  func.func @transform_2(%arg0: i32) -> (i32, i32) {
    %c0_i32 = arith.constant 0 : i32
    %c0_i32_0 = arith.constant 0 : i32
    %c0_i32_1 = arith.constant 0 : i32
    return %c0_i32, %c0_i32_0 : i32, i32
  }
  func.func @transform_3(%arg0: i32) -> (i32, i32) {
    %c0_i32 = arith.constant 0 : i32
    %c0_i32_0 = arith.constant 0 : i32
    %c0_i32_1 = arith.constant 0 : i32
    return %c0_i32, %c0_i32_0 : i32, i32
  }
  func.func @transform_4(%arg0: i32) -> (i32, i32) {
    %c0_i32 = arith.constant 0 : i32
    %c0_i32_0 = arith.constant 0 : i32
    %c0_i32_1 = arith.constant 0 : i32
    return %c0_i32, %c0_i32_0 : i32, i32
  }
  func.func @transform_5(%arg0: i32) -> (i32, i32) {
    %c0_i32 = arith.constant 0 : i32
    %c0_i32_0 = arith.constant 0 : i32
    %c0_i32_1 = arith.constant 0 : i32
    return %c0_i32, %c0_i32_0 : i32, i32
  }
  func.func @transform_6(%arg0: i32) -> i32 {
    %c0_i32 = arith.constant 0 : i32
    %c0_i32_0 = arith.constant 0 : i32
    return %c0_i32 : i32
  }
  func.func @transform_7(%arg0: i32) -> (i32, i32) {
    %c0_i32 = arith.constant 0 : i32
    %c0_i32_0 = arith.constant 0 : i32
    return %c0_i32, %arg0 : i32, i32
  }
}

</mosaic_0001>

<bundles_post_ra>
// kernel: critic_forward_packed.1
= control target key start
LH: loop header
LB: loop body
LE: loop exit
PB: predicated region body
PF: predicated region fallthrough
CT: control target
= control target key end

     0   :  { %v255_v0 = vmov 0   ;;  %vm74_vm0 = vcmask 130048   ;;  %vm144_vm1 = vcmask 261120   ;;  %s353_s2 = inlined_call_operand.vmem [shape: f32[32,1], index: 2, kind: input, shape index: {}]   ;;  %s354_s0 = inlined_call_operand.vmem [shape: bf16[16,128], index: 0, kind: input, shape index: {}]   ;;  %s355_s1 = inlined_call_operand.vmem [shape: bf16[32,16], index: 1, kind: input, shape index: {}]   ;;  %s356_s4 = inlined_call_operand.vmem [shape: f32[32,1], index: 4, kind: input, shape index: {}]   ;;  %s357_s5 = inlined_call_operand.vmem [shape: f32[32,1], index: 5, kind: input, shape index: {}]   ;;  %s358_s3 = inlined_call_operand.vmem [shape: bf16[32,32], index: 3, kind: input, shape index: {}]   ;;  %s359_s6 = inlined_call_operand.<no memory space> [shape: f32[1], index: 6, kind: input, shape index: {}]   ;;  %s360_s7 = inlined_call_operand.vmem [shape: f32[1,128], index: 7, kind: output, shape index: {}]  }
   0x1   :  { %252 = vset.pattern.permute.xlu0 %v255_v0  ;;  %v36_v1 = vld [vmem:[%s353_s2 + $0x10] sm:$0xff]  ;;  %253 = vset.pattern.permute.xlu1 %v255_v0  ;;  %v34_v2 = vld [vmem:[%s353_s2] sm:$0xff]  ;;  %v245_v4 = vld [vmem:[%s355_s1 + $0x8] sm:$0xff] }
   0x2   :  { %v243_v3 = vld [vmem:[%s354_s0] sm:$0xff]  ;;  %50 = vperm.xlu0 %252, %v36_v1   ;;  %40 = vperm.xlu1 %253, %v34_v2   ;;  %v37_v6 = vld [vmem:[%s353_s2 + $0x18] sm:$0xff]  ;;  %v35_v7 = vld [vmem:[%s353_s2 + $0x8] sm:$0xff] }
   0x3   :  { %v244_v5 = vld [vmem:[%s355_s1] sm:$0xff]  ;;  %248 = vmatpush.bf16.msra.mxu3 %v243_v3  ;;  %88 = vmatpush.bf16.msra.mxu0 %v243_v3  ;;  %v112_v8 = vld [vmem:[%s356_s4 + $0x10] sm:$0xff]  ;;  %v113_v9 = vld [vmem:[%s356_s4 + $0x18] sm:$0xff] }
   0x4   :  { %254 = vset.pattern.permute.xlu2 %v255_v0  ;;  %v175_v10 = vld [vmem:[%s357_s5 + $0x8] sm:$0xff]  ;;  %v176_v11 = vld [vmem:[%s357_s5 + $0x10] sm:$0xff]  ;;  %v110_v12 = vld [vmem:[%s356_s4] sm:$0xff] }
   0x5   :  { %116 = vperm.xlu2 %254, %v110_v12   ;;  %v111_v14 = vld [vmem:[%s356_s4 + $0x8] sm:$0xff]  ;;  %v174_v18 = vld [vmem:[%s357_s5] sm:$0xff]  ;;  %v177_v32 = vld [vmem:[%s357_s5 + $0x18] sm:$0xff] }
   0x6   :  { %232 = vmatmul.msk.bf16.vlgmr.msra.gmra.mxu3 %vm74_vm0, %v245_v4  ;;  %231 = vmatmul.msk.bf16.vlgmr.msra.gmra.mxu0 %vm74_vm0, %v244_v5  ;;  %v246_v34 = vld [vmem:[%s358_s3] sm:$0xff]  ;;  %v247_v35 = vld [vmem:[%s358_s3 + $0x8] sm:$0xff]  ;;  %v212_v4 = vstv %s359_s6 }
   0xa   :  { %55 = vperm.xlu0 %252, %v37_v6   ;;  %45 = vperm.xlu1 %253, %v35_v7  }
   0xd   :  { %121 = vperm.xlu2 %254, %v111_v14  }
  0x12   :  { %126 = vperm.xlu0 %252, %v112_v8   ;;  %131 = vperm.xlu1 %253, %v113_v9  }
  0x15   :  { %180 = vperm.xlu2 %254, %v174_v18  }
  0x1a   :  { %185 = vperm.xlu0 %252, %v175_v10   ;;  %190 = vperm.xlu1 %253, %v176_v11  }
  0x1d   :  { %195 = vperm.xlu2 %254, %v177_v32  }
  0x5f   :  { %v117_v36 = vpop.permute.xlu2 %116 }
  0x67   :  { %v122_v37 = vpop.permute.xlu2 %121 }
  0x6f   :  { %v181_v43 = vpop.permute.xlu2 %180 }
  0x74   :  { %v51_v15 = vpop.permute.xlu0 %50  ;;  %v41_v16 = vpop.permute.xlu1 %40 }
  0x77   :  { %v196_v59 = vpop.permute.xlu2 %195 }
  0x7c   :  { %v56_v20 = vpop.permute.xlu0 %55  ;;  %v46_v22 = vpop.permute.xlu1 %45 }
  0x83   :  { %v90_v13 = vpop.f32.mrf.mxu0 }
  0x84   :  { %v91_v24 = vadd.f32 %v90_v13, %v41_v16  ;;  %v127_v39 = vpop.permute.xlu0 %126  ;;  %v132_v41 = vpop.permute.xlu1 %131 }
  0x86   :  { %v100_v29 = vmax.f32 %v91_v24, 0.0 }
  0x89   :  { %v95_v17 = vpop.f32.mrf.mxu3 }
  0x8a   :  { %v96_v21 = vadd.f32 %v95_v17, %v51_v15 }
  0x8b   :  { %v92_v19 = vpop.f32.mrf.mxu0 }
  0x8c   :  { %v93_v25 = vadd.f32 %v92_v19, %v46_v22  ;;  %v102_v27 = vmax.f32 %v96_v21, 0.0  ;;  %v186_v49 = vpop.permute.xlu0 %185  ;;  %v191_v56 = vpop.permute.xlu1 %190 }
  0x8e   :  { %v101_v30 = vmax.f32 %v93_v25, 0.0 }
  0x90   :  { %v108_v33 = vpack.c.bf16 %v101_v30, %v100_v29 }
  0x91   :  { %v97_v23 = vpop.f32.mrf.mxu3 }
  0x92   :  { %v98_v26 = vadd.f32 %v97_v23, %v56_v20 }
  0x94   :  { %v103_v28 = vmax.f32 %v98_v26, 0.0 }
  0x96   :  { %v109_v31 = vpack.c.bf16 %v103_v28, %v102_v27 }
  0x98   :  { %157 = vmatpush.bf16.msra.mxu1 %v109_v31  ;;  %249 = vmatpush.bf16.msra.mxu2 %v109_v31 }
  0x9c   :  { %158 = vmatpush.bf16.msra.mxu1 %v108_v33  ;;  %250 = vmatpush.bf16.msra.mxu2 %v108_v33 }
  0x9f   :  { %241 = vmatmul.msk.bf16.vlgmr.msra.gmra.mxu1 %vm144_vm1, %v246_v34  ;;  %242 = vmatmul.msk.bf16.vlgmr.msra.gmra.mxu2 %vm144_vm1, %v247_v35 }
 0x11c   :  { %v160_v38 = vpop.f32.mrf.mxu1 }
 0x11d   :  { %v161_v40 = vadd.f32 %v160_v38, %v117_v36 }
 0x11f   :  { %v170_v45 = vmax.f32 %v161_v40, 0.0 }
 0x121   :  { %v198_v50 = vmul.f32 %v181_v43, %v170_v45 }
 0x122   :  { %v165_v42 = vpop.f32.mrf.mxu2 }
 0x123   :  { %v166_v46 = vadd.f32 %v165_v42, %v127_v39 }
 0x124   :  { %v162_v44 = vpop.f32.mrf.mxu1 }
 0x125   :  { %v163_v47 = vadd.f32 %v162_v44, %v122_v37  ;;  %v172_v51 = vmax.f32 %v166_v46, 0.0 }
 0x127   :  { %v171_v48 = vmax.f32 %v163_v47, 0.0  ;;  %v200_v57 = vmul.f32 %v191_v56, %v172_v51 }
 0x129   :  { %v199_v52 = vmul.f32 %v186_v49, %v171_v48 }
 0x12a   :  { %v167_v53 = vpop.f32.mrf.mxu2 }
 0x12b   :  { %v202_v54 = vadd.f32 %v199_v52, %v198_v50  ;;  %v168_v55 = vadd.f32 %v167_v53, %v132_v41 }
 0x12d   :  { %v173_v58 = vmax.f32 %v168_v55, 0.0  ;;  %v203_v61 = vadd.f32 %v202_v54, %v200_v57 }
 0x12f   :  { %v201_v60 = vmul.f32 %v196_v59, %v173_v58 }
 0x131   :  { %v204_v62 = vadd.f32 %v203_v61, %v201_v60 }
 0x133   :  { %v205_v63 = vrot.slane %v204_v62, 4 }
 0x135   :  { %v206_v0 = vadd.f32 %v205_v63, %v204_v62 }
 0x137   :  { %v207_v1 = vrot.slane %v206_v0, 2 }
 0x139   :  { %v208_v2 = vadd.f32 %v207_v1, %v206_v0 }
 0x13b   :  { %v209_v3 = vrot.slane %v208_v2, 1 }
 0x13d   :  { %v210_v5 = vadd.f32 %v209_v3, %v208_v2 }
 0x13f   :  { %v213_v6 = vadd.f32 %v212_v4, %v210_v5 }
 0x141   :  { %214 = vst [vmem:[%s360_s7] sm:$0x1] %v213_v6 }

</bundles_post_ra>
